<compile_context>
chip_gen: v7x
topology: tpu7x:2x2x1
jax: 0.10.0
libtpu: 0.0.40
codegen_flags: <defaults>
</compile_context>

<pallas_src>
import functools

import jax
import jax.numpy as jnp
from jax import lax
from jax.experimental import pallas as pl
from jax.experimental.pallas import tpu as pltpu

_EPS = 1e-8


def _contrastive_loss_kernel(x_ref, p_ref, n_ref, o_ref, *, batch, row_tile, ragged):
    i = pl.program_id(0)

    x = x_ref[...].astype(jnp.float32)
    p = p_ref[...].astype(jnp.float32)
    n = n_ref[...].astype(jnp.float32)

    tb = x.shape[0]

    # Hoisted self-dot of x, shared by both cosine terms.
    sxx = jnp.sum(x * x, axis=1, keepdims=True)          # (tb, 1)

    if ragged:
        # Only emitted when batch % row_tile != 0 (static trace-time branch).
        row = i * row_tile + lax.broadcasted_iota(jnp.int32, (tb, 1), 0)
        valid = row < batch
    else:
        valid = None

    def abs_cos_sum(b):
        dot = jnp.sum(x * b, axis=1, keepdims=True)      # (tb, 1)
        sbb = jnp.sum(b * b, axis=1, keepdims=True)      # (tb, 1)
        # dot * rsqrt(max(||x||^2*||b||^2, eps^2)) == dot / max(||x||*||b||, eps)
        inv = lax.rsqrt(jnp.maximum(sxx * sbb, _EPS * _EPS))   # EUP slot
        c = jnp.abs(dot * inv)
        if valid is not None:
            # Keep as a select: padded rows may hold garbage/NaN, which a
            # multiply-by-zero would propagate.
            c = jnp.where(valid, c, 0.0)
        return jnp.sum(c)

    partial = abs_cos_sum(p) + abs_cos_sum(n)

    # Lane-dense (8,128) output block per grid step (unmasked vst); only
    # element [0, 0] carries the partial sum, the rest are zeros so a plain
    # jnp.sum over the whole output recovers the total.
    sub = lax.broadcasted_iota(jnp.int32, (8, 128), 0)
    lane = lax.broadcasted_iota(jnp.int32, (8, 128), 1)
    o_ref[...] = jnp.where((sub == 0) & (lane == 0), partial, 0.0)


def _vmem_budget():
    """Generation-aware byte budget for the 6 double-buffered input blocks."""
    fallback = 64 * 1024 * 1024  # conservative (v7x-sized) if query fails
    try:
        vmem = getattr(pltpu.get_tpu_info(), "vmem_capacity_bytes", fallback)
    except Exception:  # pragma: no cover - e.g. non-TPU tracing environments
        vmem = fallback
    # ~1/3 of physical VMEM for the pipelined input blocks, capped at 48 MiB:
    #   v5e/v6e (128 MiB physical) -> ~42 MiB; v7x (64 MiB) -> ~21 MiB.
    budget = min(vmem // 3, 48 * 1024 * 1024)
    # Explicit scoped-VMEM limit matching the budget (v5e default is 16 MiB).
    vmem_limit = int(min(budget + (8 << 20), vmem - (8 << 20)))
    return int(budget), vmem_limit


def _pick_row_tile(batch, d, itemsize, budget):
    # Layout-aware footprint: D pads to a multiple of 128 lanes in VMEM, rows
    # pad to the dtype sublane multiple (f32: 8, bf16: 16, int8/fp8: 32).
    d_pad = ((d + 127) // 128) * 128
    sub = max(8, 32 // max(itemsize, 1))
    per_row = 3 * 2 * d_pad * itemsize            # 3 inputs x 2 pipeline buffers
    tb = min(8192, budget // max(per_row, 1))     # size by bytes, not row count
    tb = max(sub, (tb // sub) * sub)
    if batch <= tb:
        return batch                              # single full-extent block
    return tb
    # TODO(synk): add an inner D-chunk grid axis (partial dot/sxx/sbb per row)
    # for very large D where even `sub` rows x 6 buffers exceed the budget.


def contrastive_loss(inputs, positives, negatives, *, row_tile=None):
    B, D = inputs.shape
    itemsize = jnp.dtype(inputs.dtype).itemsize
    budget, vmem_limit = _vmem_budget()
    tb = row_tile if row_tile is not None else _pick_row_tile(B, D, itemsize, budget)
    grid_n = pl.cdiv(B, tb)
    ragged = (B % tb) != 0

    kernel = functools.partial(
        _contrastive_loss_kernel, batch=B, row_tile=tb, ragged=ragged
    )
    spec = pl.BlockSpec((tb, D), lambda i: (i, 0))

    cost = pl.CostEstimate(
        flops=9 * B * D,                                  # 3 dot-product passes + scale/abs
        transcendentals=2 * B,                            # one rsqrt per (row, pair)
        bytes_accessed=3 * B * D * itemsize + grid_n * 8 * 128 * 4,
    )

    partials = pl.pallas_call(
        kernel,
        out_shape=jax.ShapeDtypeStruct((8 * grid_n, 128), jnp.float32),
        grid_spec=pltpu.PrefetchScalarGridSpec(
            num_scalar_prefetch=0,
            grid=(grid_n,),
            in_specs=[spec, spec, spec],
            out_specs=pl.BlockSpec((8, 128), lambda i: (i, 0)),
        ),
        compiler_params=pltpu.CompilerParams(
            # Independent per-tile partial sums -> grid axis can shard across
            # both TensorCores on v7x.
            dimension_semantics=("parallel",),
            vmem_limit_bytes=vmem_limit,
        ),
        cost_estimate=cost,
    )(inputs, positives, negatives)

    # Final reduction + mean + relu in plain JAX (tiny).
    mean_sum = jnp.sum(partials) * (1.0 / B)
    return jnp.maximum(mean_sum, 0.0)


def _reference(inputs, positives, negatives):
    # Matches torch.nn.CosineSimilarity: clamp on the product of the norms.
    def cos_sim(a, b):
        dot = jnp.sum(a * b, axis=1)
        na = jnp.sqrt(jnp.sum(a * a, axis=1))
        nb = jnp.sqrt(jnp.sum(b * b, axis=1))
        return dot / jnp.maximum(na * nb, _EPS)

    same = jnp.mean(jnp.abs(cos_sim(inputs, positives)))
    diff = jnp.mean(jnp.abs(cos_sim(inputs, negatives)))
    return jnp.maximum(same + diff, 0.0)


if __name__ == "__main__":
    key = jax.random.PRNGKey(0)
    k1, k2, k3 = jax.random.split(key, 3)
    B, D = 8, 32  # batch=8, hidden=32
    inputs = jax.random.normal(k1, (B, D), dtype=jnp.float32)
    positives = jax.random.normal(k2, (B, D), dtype=jnp.float32)
    negatives = jax.random.normal(k3, (B, D), dtype=jnp.float32)

    loss = contrastive_loss(inputs, positives, negatives)
    jax.block_until_ready(loss)
    ref = _reference(inputs, positives, negatives)
    assert jnp.allclose(loss, ref, atol=1e-5, rtol=1e-5), (loss, ref)

    # Exercise the multi-tile parallel partial-sum path plus the ragged last
    # tile by forcing a small row tile (B=20 rows, TB=8 -> grid of 3).
    k4, k5, k6 = jax.random.split(jax.random.PRNGKey(1), 3)
    B2 = 20
    x2 = jax.random.normal(k4, (B2, D), dtype=jnp.float32)
    p2 = jax.random.normal(k5, (B2, D), dtype=jnp.float32)
    n2 = jax.random.normal(k6, (B2, D), dtype=jnp.float32)
    loss2 = contrastive_loss(x2, p2, n2, row_tile=8)
    jax.block_until_ready(loss2)
    ref2 = _reference(x2, p2, n2)
    assert jnp.allclose(loss2, ref2, atol=1e-5, rtol=1e-5), (loss2, ref2)

    # Evenly-divisible multi-tile case (no mask emitted at all).
    k7, k8, k9 = jax.random.split(jax.random.PRNGKey(2), 3)
    B3 = 32
    x3 = jax.random.normal(k7, (B3, D), dtype=jnp.float32)
    p3 = jax.random.normal(k8, (B3, D), dtype=jnp.float32)
    n3 = jax.random.normal(k9, (B3, D), dtype=jnp.float32)
    loss3 = contrastive_loss(x3, p3, n3, row_tile=8)
    jax.block_until_ready(loss3)
    ref3 = _reference(x3, p3, n3)
    assert jnp.allclose(loss3, ref3, atol=1e-5, rtol=1e-5), (loss3, ref3)

    print("KERNEL_OK")
</pallas_src>

<mosaic_0001>
module attributes {stable_mosaic.version = 11 : i64} {
  func.func @_contrastive_loss_kernel(%arg0: i32, %arg1: memref<8x32xf32, #tpu.memory_space<vmem>>, %arg2: memref<8x32xf32, #tpu.memory_space<vmem>>, %arg3: memref<8x32xf32, #tpu.memory_space<vmem>>, %arg4: memref<8x128xf32, #tpu.memory_space<vmem>>) attributes {dimension_semantics = [#tpu.dimension_semantics<parallel>], iteration_bounds = array<i64: 1>, scalar_prefetch = 0 : i64, scratch_operands = 0 : i64, tpu.core_type = #tpu.core_type<tc>, window_params = [{transform_indices = @transform_0, window_bounds = array<i64: 8, 32>}, {transform_indices = @transform_1, window_bounds = array<i64: 8, 32>}, {transform_indices = @transform_2, window_bounds = array<i64: 8, 32>}, {transform_indices = @transform_3, window_bounds = array<i64: 8, 128>}]} {
    %c0 = arith.constant 0 : index
    %c0_0 = arith.constant 0 : index
    %0 = vector.load %arg1[%c0, %c0_0] : memref<8x32xf32, #tpu.memory_space<vmem>>, vector<8x32xf32>
    %c0_1 = arith.constant 0 : index
    %c0_2 = arith.constant 0 : index
    %1 = vector.load %arg2[%c0_1, %c0_2] : memref<8x32xf32, #tpu.memory_space<vmem>>, vector<8x32xf32>
    %c0_3 = arith.constant 0 : index
    %c0_4 = arith.constant 0 : index
    %2 = vector.load %arg3[%c0_3, %c0_4] : memref<8x32xf32, #tpu.memory_space<vmem>>, vector<8x32xf32>
    %3 = arith.mulf %0, %0 : vector<8x32xf32>
    %cst = arith.constant dense<0.000000e+00> : vector<8xf32>
    %4 = vector.multi_reduction <add>, %3, %cst [1] : vector<8x32xf32> to vector<8xf32>
    %5 = vector.shape_cast %4 : vector<8xf32> to vector<8x1xf32>
    %6 = arith.mulf %0, %1 : vector<8x32xf32>
    %cst_5 = arith.constant dense<0.000000e+00> : vector<8xf32>
    %7 = vector.multi_reduction <add>, %6, %cst_5 [1] : vector<8x32xf32> to vector<8xf32>
    %8 = vector.shape_cast %7 : vector<8xf32> to vector<8x1xf32>
    %9 = arith.mulf %1, %1 : vector<8x32xf32>
    %cst_6 = arith.constant dense<0.000000e+00> : vector<8xf32>
    %10 = vector.multi_reduction <add>, %9, %cst_6 [1] : vector<8x32xf32> to vector<8xf32>
    %11 = vector.shape_cast %10 : vector<8xf32> to vector<8x1xf32>
    %12 = arith.mulf %5, %11 : vector<8x1xf32>
    %cst_7 = arith.constant 1.000000e-16 : f32
    %13 = vector.broadcast %cst_7 : f32 to vector<8x1xf32>
    %14 = arith.maximumf %12, %13 : vector<8x1xf32>
    %15 = math.rsqrt %14 : vector<8x1xf32>
    %16 = arith.mulf %8, %15 : vector<8x1xf32>
    %17 = math.absf %16 : vector<8x1xf32>
    %18 = vector.shape_cast %17 : vector<8x1xf32> to vector<1x8x1xf32>
    %cst_8 = arith.constant dense<0.000000e+00> : vector<1xf32>
    %19 = vector.multi_reduction <add>, %18, %cst_8 [1, 2] : vector<1x8x1xf32> to vector<1xf32>
    %20 = vector.shape_cast %19 : vector<1xf32> to vector<1x1x1xf32>
    %21 = vector.extract %20[0, 0, 0] : f32 from vector<1x1x1xf32>
    %22 = arith.mulf %0, %2 : vector<8x32xf32>
    %cst_9 = arith.constant dense<0.000000e+00> : vector<8xf32>
    %23 = vector.multi_reduction <add>, %22, %cst_9 [1] : vector<8x32xf32> to vector<8xf32>
    %24 = vector.shape_cast %23 : vector<8xf32> to vector<8x1xf32>
    %25 = arith.mulf %2, %2 : vector<8x32xf32>
    %cst_10 = arith.constant dense<0.000000e+00> : vector<8xf32>
    %26 = vector.multi_reduction <add>, %25, %cst_10 [1] : vector<8x32xf32> to vector<8xf32>
    %27 = vector.shape_cast %26 : vector<8xf32> to vector<8x1xf32>
    %28 = arith.mulf %5, %27 : vector<8x1xf32>
    %cst_11 = arith.constant 1.000000e-16 : f32
    %29 = vector.broadcast %cst_11 : f32 to vector<8x1xf32>
    %30 = arith.maximumf %28, %29 : vector<8x1xf32>
    %31 = math.rsqrt %30 : vector<8x1xf32>
    %32 = arith.mulf %24, %31 : vector<8x1xf32>
    %33 = math.absf %32 : vector<8x1xf32>
    %34 = vector.shape_cast %33 : vector<8x1xf32> to vector<1x8x1xf32>
    %cst_12 = arith.constant dense<0.000000e+00> : vector<1xf32>
    %35 = vector.multi_reduction <add>, %34, %cst_12 [1, 2] : vector<1x8x1xf32> to vector<1xf32>
    %36 = vector.shape_cast %35 : vector<1xf32> to vector<1x1x1xf32>
    %37 = vector.extract %36[0, 0, 0] : f32 from vector<1x1x1xf32>
    %38 = arith.addf %21, %37 : f32
    %39 = tpu.iota {dimensions = array<i32: 0>} : vector<8x128xi32>
    %40 = tpu.iota {dimensions = array<i32: 1>} : vector<8x128xi32>
    %c0_i32 = arith.constant 0 : i32
    %41 = vector.broadcast %c0_i32 : i32 to vector<8x128xi32>
    %42 = arith.cmpi eq, %39, %41 : vector<8x128xi32>
    %c0_i32_13 = arith.constant 0 : i32
    %43 = vector.broadcast %c0_i32_13 : i32 to vector<8x128xi32>
    %44 = arith.cmpi eq, %40, %43 : vector<8x128xi32>
    %45 = arith.andi %42, %44 : vector<8x128xi1>
    %cst_14 = arith.constant 0.000000e+00 : f32
    %46 = vector.broadcast %38 : f32 to vector<8x128xf32>
    %47 = vector.broadcast %cst_14 : f32 to vector<8x128xf32>
    %48 = arith.select %45, %46, %47 : vector<8x128xi1>, vector<8x128xf32>
    %c0_15 = arith.constant 0 : index
    %c0_16 = arith.constant 0 : index
    %49 = vector.load %arg4[%c0_15, %c0_16] : memref<8x128xf32, #tpu.memory_space<vmem>>, vector<8x128xf32>
    tpu.vector_store %arg4[%c0_15, %c0_16], %48 {strides = array<i32>} : memref<8x128xf32, #tpu.memory_space<vmem>>, vector<8x128xf32>,
    return
  }
  func.func @transform_0(%arg0: i32) -> (i32, i32) {
    %c0_i32 = arith.constant 0 : i32
    %c0_i32_0 = arith.constant 0 : i32
    return %arg0, %c0_i32 : i32, i32
  }
  func.func @transform_1(%arg0: i32) -> (i32, i32) {
    %c0_i32 = arith.constant 0 : i32
    %c0_i32_0 = arith.constant 0 : i32
    return %arg0, %c0_i32 : i32, i32
  }
  func.func @transform_2(%arg0: i32) -> (i32, i32) {
    %c0_i32 = arith.constant 0 : i32
    %c0_i32_0 = arith.constant 0 : i32
    return %arg0, %c0_i32 : i32, i32
  }
  func.func @transform_3(%arg0: i32) -> (i32, i32) {
    %c0_i32 = arith.constant 0 : i32
    %c0_i32_0 = arith.constant 0 : i32
    return %arg0, %c0_i32 : i32, i32
  }
}

</mosaic_0001>

<bundles_post_ra>
// kernel: tpu_custom_call.1
= control target key start
LH: loop header
LB: loop body
LE: loop exit
PB: predicated region body
PF: predicated region fallthrough
CT: control target
= control target key end

     0   :  { %8 = vsyncpa [#allocation3], 0  ;;  %s315_s0 = inlined_call_operand.hbm [shape: f32[8,32], index: 0, kind: input, shape index: {}]   ;;  %s316_s1 = inlined_call_operand.hbm [shape: f32[8,32], index: 1, kind: input, shape index: {}]   ;;  %s317_s2 = inlined_call_operand.hbm [shape: f32[8,32], index: 2, kind: input, shape index: {}]   ;;  %s318_s3 = inlined_call_operand.hbm [shape: f32[8,128], index: 3, kind: output, shape index: {}]  }
   0x1   :  { %9 = vsyncpa [#allocation6], 0 }
   0x2   :  { %10 = vsyncpa [#allocation4], 0  ;;  %s238_s12 = smov [#allocation5]   ;;  %s239_s14 = smov [#allocation2]  }
   0x3   :  { %s27_s13 = sshll.u32 %s238_s12, 4  ;;  %s17_s15 = sshll.u32 %s239_s14, 4  ;;  %s28_s13 = int_to_ptr.vmem [resolvable:$true] %s27_s13  ;;  %s18_s15 = int_to_ptr.vmem [resolvable:$true] %s17_s15 }
   0x4   :  { %s144_s18 = scalar_lea.hbm %s316_s1, 128 }
   0x5   :  { %p145_p0 = scmp.ne.s32.totalorder %s316_s1, %s144_s18  ;;  %p148_p1 = scmp.lt.u32.totalorder %s144_s18, %s316_s1 }
   0x7   :  { %p150_p2 = pnand %p148_p1, %p145_p0 }
   0x9   :  { %153 = shalt.err (!%p150_p2)
}
   0xa   :  { %s154_s23 = scalar_lea.vmem %s28_s13, 128  ;;  %p159_p4 = scmp.lt.s32.totalorder %s28_s13, %s28_s13 }
   0xb   :  { %p155_p3 = scmp.ne.s32.totalorder %s28_s13, %s154_s23  ;;  %p160_p5 = scmp.lt.s32.totalorder %s154_s23, %s154_s23 }
   0xd   :  { %p161_p6 = por %p160_p5, %p159_p4 }
   0xf   :  { %p162_p7 = pnand %p161_p6, %p155_p3 }
  0x11   :  { %165 = shalt.err (!%p162_p7)
}
  0x12   :  { %30 = dma.hbm_to_vmem [thread:$0]  %s316_s1, 128, %s28_s13, [#allocation6]  }
  0x13   :  { %s166_s28 = scalar_lea.hbm %s315_s0, 128 }
  0x14   :  { %p167_p8 = scmp.ne.s32.totalorder %s315_s0, %s166_s28  ;;  %p170_p9 = scmp.lt.u32.totalorder %s166_s28, %s315_s0 }
  0x16   :  { %p172_p10 = pnand %p170_p9, %p167_p8 }
  0x18   :  { %175 = shalt.err (!%p172_p10)
}
  0x19   :  { %s176_s6 = scalar_lea.vmem %s18_s15, 128  ;;  %p181_p12 = scmp.lt.s32.totalorder %s18_s15, %s18_s15 }
  0x1a   :  { %p177_p11 = scmp.ne.s32.totalorder %s18_s15, %s176_s6  ;;  %p182_p13 = scmp.lt.s32.totalorder %s176_s6, %s176_s6 }
  0x1c   :  { %p183_p0 = por %p182_p13, %p181_p12 }
  0x1e   :  { %p184_p1 = pnand %p183_p0, %p177_p11 }
  0x20   :  { %187 = shalt.err (!%p184_p1)
}
  0x21   :  { %20 = dma.hbm_to_vmem [thread:$0]  %s315_s0, 128, %s18_s15, [#allocation3]  }
  0x22   :  { %s240_s8 = smov [#allocation7]   ;;  %s188_s12 = scalar_lea.hbm %s317_s2, 128 }
  0x23   :  { %s37_s9 = sshll.u32 %s240_s8, 4  ;;  %p189_p2 = scmp.ne.s32.totalorder %s317_s2, %s188_s12  ;;  %s38_s9 = int_to_ptr.vmem [resolvable:$true] %s37_s9 }
  0x24   :  { %p192_p3 = scmp.lt.u32.totalorder %s188_s12, %s317_s2 }
  0x26   :  { %p194_p4 = pnand %p192_p3, %p189_p2 }
  0x28   :  { %197 = shalt.err (!%p194_p4)
}
  0x29   :  { %s198_s18 = scalar_lea.vmem %s38_s9, 128  ;;  %p203_p6 = scmp.lt.s32.totalorder %s38_s9, %s38_s9 }
  0x2a   :  { %p199_p5 = scmp.ne.s32.totalorder %s38_s9, %s198_s18  ;;  %p204_p7 = scmp.lt.s32.totalorder %s198_s18, %s198_s18 }
  0x2c   :  { %p205_p8 = por %p204_p7, %p203_p6 }
  0x2e   :  { %p206_p9 = pnand %p205_p8, %p199_p5 }
  0x30   :  { %209 = shalt.err (!%p206_p9)
}
  0x31   :  { %40 = dma.hbm_to_vmem [thread:$0]  %s317_s2, 128, %s38_s9, [#allocation6]  }
  0x32   :  { %232 = dma.done.wait [#allocation3], 128  }
  0x33   :  { %233 = vsyncadd [#allocation3], 4294967168 }
  0x34   :  { %234 = dma.done.wait [#allocation6], 256  }
  0x35   :  { %235 = vsyncadd [#allocation6], 4294967040  ;;  %v52_v0 = vld [vmem:[#allocation7] sm:$0xff]  ;;  %vm54_vm0 = vcmask 261120   ;;  %v50_v1 = vld [vmem:[#allocation2] sm:$0xff]  ;;  %vm71_vm1 = vcmask 7168   ;;  %v106_v44 = vlaneseq }
  0x36   :  { %v51_v2 = vld [vmem:[#allocation5] sm:$0xff]  ;;  %v86_v3 = vmul.f32 %v52_v0, %v52_v0  ;;  %v53_v4 = vmul.f32 %v50_v1, %v50_v1  ;;  %v82_v10 = vmul.f32 %v52_v0, %v50_v1  ;;  %s241_s20 = smov [#allocation8]  }
  0x37   :  { %v62_v5 = vmul.f32 %v51_v2, %v51_v2  ;;  %v58_v6 = vmul.f32 %v51_v2, %v50_v1  ;;  %v107_v45 = vshrl.u32 %v106_v44, 7  ;;  %v109_v46 = vand.u32 127, %v106_v44  ;;  %s122_s21 = sshll.u32 %s241_s20, 4  ;;  %s123_s21 = int_to_ptr.vmem [resolvable:$true] %s122_s21 }
  0x38   :  { %v87_v7 = vsel %vm54_vm0, %v86_v3, 0.0  ;;  %v55_v8 = vsel %vm54_vm0, %v53_v4, 0.0  ;;  %v83_v12 = vsel %vm54_vm0, %v82_v10, 0.0  ;;  %s210_s23 = scalar_lea.vmem %s123_s21, 128  ;;  %p215_p11 = scmp.lt.s32.totalorder %s123_s21, %s123_s21 }
  0x39   :  { %88 = vadd.xlane.f32.xlu1 %v87_v7  ;;  %56 = vadd.xlane.f32.xlu0 %v55_v8  ;;  %v63_v9 = vsel %vm54_vm0, %v62_v5, 0.0  ;;  %v59_v11 = vsel %vm54_vm0, %v58_v6, 0.0  ;;  %vm110_vm2 = vcmp.eq.s32.totalorder %v107_v45, 0  ;;  %vm111_vm3 = vcmp.eq.s32.totalorder %v109_v46, 0  ;;  %p211_p10 = scmp.ne.s32.totalorder %s123_s21, %s210_s23  ;;  %p216_p12 = scmp.lt.s32.totalorder %s210_s23, %s210_s23 }
  0x3a   :  { %vm112_vm4 = vmand %vm110_vm2, %vm111_vm3 }
  0x3b   :  { %p217_p13 = por %p216_p12, %p215_p11 }
  0x3d   :  { %64 = vadd.xlane.f32.xlu0 %v63_v9  ;;  %60 = vadd.xlane.f32.xlu1 %v59_v11  ;;  %p218_p0 = pnand %p217_p13, %p211_p10 }
  0x41   :  { %84 = vadd.xlane.f32.xlu0 %v83_v12 }
  0xc6   :  { %v89_v13 = vpop.xlane.xlu1 %88  ;;  %v57_v14 = vpop.xlane.xlu0 %56 }
  0xc7   :  { %v90_v15 = vmul.f32 %v89_v13, %v57_v14 }
  0xc9   :  { %v91_v16 = vmax.f32 %v90_v15, 1e-16 }
  0xca   :  { %v65_v17 = vpop.xlane.xlu0 %64  ;;  %v61_v23 = vpop.xlane.xlu1 %60 }
  0xcb   :  { %140 = vrsqrt.f32 %v91_v16  ;;  %v66_v18 = vmul.f32 %v65_v17, %v57_v14 }
  0xcd   :  { %v67_v19 = vmax.f32 %v66_v18, 1e-16 }
  0xce   :  { %v85_v20 = vpop.xlane.xlu0 %84 }
  0xcf   :  { %142 = vrsqrt.f32 %v67_v19 }
  0xd5   :  { %v141_v21 = vpop.eup %140 }
  0xd6   :  { %v93_v22 = vmul.f32 %v141_v21, %v85_v20 }
  0xd8   :  { %v94_v24 = vand.u32 2147483647, %v93_v22 }
  0xd9   :  { %v143_v25 = vpop.eup %142 }
  0xda   :  { %v69_v26 = vmul.f32 %v143_v25, %v61_v23  ;;  %v95_v27 = vsel %vm71_vm1, %v94_v24, 0.0 }
  0xdb   :  { %96 = vadd.xlane.f32.xlu0 %v95_v27 }
  0xdc   :  { %v70_v28 = vand.u32 2147483647, %v69_v26 }
  0xde   :  { %v72_v29 = vsel %vm71_vm1, %v70_v28, 0.0 }
  0xdf   :  { %73 = vadd.xlane.f32.xlu1 %v72_v29 }
 0x168   :  { %v97_v30 = vpop.xlane.xlu0 %96 }
 0x169   :  { %v98_v31 = vrot.slane %v97_v30, 4 }
 0x16b   :  { %v99_v32 = vadd.f32 %v98_v31, %v97_v30 }
 0x16c   :  { %v74_v33 = vpop.xlane.xlu1 %73 }
 0x16d   :  { %v100_v34 = vrot.slane %v99_v32, 2  ;;  %v75_v35 = vrot.slane %v74_v33, 4 }
 0x16f   :  { %v76_v36 = vadd.f32 %v75_v35, %v74_v33  ;;  %v101_v37 = vadd.f32 %v100_v34, %v99_v32 }
 0x171   :  { %v77_v38 = vrot.slane %v76_v36, 2  ;;  %v102_v40 = vrot.slane %v101_v37, 1 }
 0x173   :  { %v78_v39 = vadd.f32 %v77_v38, %v76_v36  ;;  %v103_v43 = vadd.f32 %v102_v40, %v101_v37 }
 0x175   :  { %v79_v41 = vrot.slane %v78_v39, 1 }
 0x177   :  { %v80_v42 = vadd.f32 %v79_v41, %v78_v39 }
 0x179   :  { %132 = vpush %v80_v42 }
 0x17a   :  { %134 = vpush %v103_v43 }
 0x1aa   :  { %s133_s2 = spop %132 }
 0x1ab   :  { %s135_s19 = spop %134 }
 0x1ac   :  { %s105_s22 = sadd.f32 %s135_s19, %s133_s2 }
 0x1ae   :  { %v113_v47 = vstv %s105_s22 }
 0x1af   :  { %v114_v48 = vsel %vm112_vm4, %v113_v47, 0.0 }
 0x1b0   :  { %115 = vst [vmem:[#allocation8] sm:$0xff] %v114_v48 }
 0x1b1   :  { %221 = shalt.err (!%p218_p0)
}
 0x1b2   :  { %s222_s26 = scalar_lea.hbm %s318_s3, 128 }
 0x1b3   :  { %p223_p1 = scmp.ne.s32.totalorder %s318_s3, %s222_s26  ;;  %p226_p2 = scmp.lt.u32.totalorder %s222_s26, %s318_s3 }
 0x1b5   :  { %p228_p3 = pnand %p226_p2, %p223_p1 }
 0x1b7   :  { %231 = shalt.err (!%p228_p3)
}
 0x1b8   :  { %125 = dma.vmem_to_hbm [thread:$0]  %s123_s21, 128, %s318_s3, [#allocation4]  }
 0x1b9   :  { %236 = dma.done.wait [#allocation4], 128  }
 0x1ba   :  { %237 = vsyncadd [#allocation4], 4294967168 }
 0x1bb   :  { %129 = vsyncpa [#allocation3], 1 }
 0x1bc   :  { %130 = vsyncpa [#allocation6], 1 }
 0x1bd   :  { %131 = vsyncpa [#allocation4], 1 }

</bundles_post_ra>
